<compile_context>
chip_gen: v7x
topology: tpu7x:2x2x1
jax: 0.10.0
libtpu: 0.0.40
codegen_flags: <defaults>
</compile_context>

<pallas_src>
import functools

import jax
import jax.numpy as jnp
from jax.experimental import pallas as pl
from jax.experimental.pallas import tpu as pltpu


# ----------------------------- kernels --------------------------------------


def _softmax_kernel(x_ref, probs_ref):
    # TODO(synk): BaseModel.forward is abstract; treated as identity here.
    x = x_ref[...].astype(jnp.float32)              # in-kernel cast (bf16 ok)
    m = jnp.max(x, axis=1, keepdims=True)           # (TB, 1)
    e = jnp.exp(x - m)                              # (TB, C)
    s = jnp.sum(e, axis=1, keepdims=True)           # (TB, 1)
    inv = pl.reciprocal(s, approx=True)             # EUP slot (frees VALU)
    probs_ref[...] = (e * inv).astype(probs_ref.dtype)


def _argmax_kernel(x_ref, idx_ref):
    # First-maximal-index along dim=1 (matches torch.argmax tie-breaking).
    x = x_ref[...].astype(jnp.float32)
    C = x.shape[1]
    m = jnp.max(x, axis=1, keepdims=True)
    col = jax.lax.broadcasted_iota(jnp.int32, x.shape, 1)
    cand = jnp.where(x == m, col, jnp.int32(C))     # sentinel C for non-max
    idx = jnp.min(cand, axis=1)                     # (TB,) int32
    idx_ref[...] = idx.reshape(1, -1)               # lane-dense (1, TB) store


# ----------------------------- wrapper ---------------------------------------


def _choose_tile_b(B: int, C: int, itemsize: int = 4,
                   target_tile_bytes: int = 2 * 1024 * 1024) -> int:
    """Pick a batch tile: ~2 MiB per (TILE_B, C) tile, lane/sublane aligned."""
    rows = max(8, target_tile_bytes // max(1, C * itemsize))
    if B <= rows or B <= 128:
        return B                        # full-extent block(s), exempt from 8/128 rule
    # multiple of 128 -> valid sublane count for the input block AND a
    # lane-dense, 128-divisible last dim for the (1, TILE_B) argmax block.
    return max(128, min(rows, B) // 128 * 128)


@functools.partial(jax.jit, static_argnames=("model_type", "return_probs"))
def base_model_predict(x, model_type: str = "classifier",
                       return_probs: bool = False):
    """JAX/Pallas equivalent of BaseModel.predict (forward == identity)."""
    if model_type != "classifier":
        # 'autoencoder' / 'generic': predict() returns forward(x) unchanged.
        return x

    B, C = x.shape
    # TODO(synk): vocab-scale C (>~16k) would need a second grid axis with an
    # online-softmax accumulator; typical classifier C fits one row block.
    tile_b = _choose_tile_b(B, C, 4)
    grid = (pl.cdiv(B, tile_b),)
    in_spec = pl.BlockSpec((tile_b, C), lambda i: (i, 0))
    params = pltpu.CompilerParams(dimension_semantics=("parallel",))

    if return_probs:
        # torch.softmax(output, dim=1); dtype-preserving like torch.
        return pl.pallas_call(
            _softmax_kernel,
            out_shape=jax.ShapeDtypeStruct((B, C), x.dtype),
            grid=grid,
            in_specs=[in_spec],
            out_specs=pl.BlockSpec((tile_b, C), lambda i: (i, 0)),
            compiler_params=params,
        )(x)

    # torch.argmax(output, dim=1) -> (B,) indices.
    # TODO(synk): torch returns int64; int32 is used here (JAX x64 disabled).
    idx_row = pl.pallas_call(
        _argmax_kernel,
        out_shape=jax.ShapeDtypeStruct((1, B), jnp.int32),
        grid=grid,
        in_specs=[in_spec],
        out_specs=pl.BlockSpec((1, tile_b), lambda i: (0, i)),
        compiler_params=params,
    )(x)
    return idx_row.reshape(B)


# ----------------------------- demo / checks ---------------------------------


if __name__ == "__main__":
    key = jax.random.PRNGKey(0)

    # Small logits batch (batch, classes) — single full-extent tile path.
    B, C = 8, 32
    x = jax.random.normal(key, (B, C), dtype=jnp.float32)

    probs = base_model_predict(x, model_type="classifier", return_probs=True)
    preds = base_model_predict(x, model_type="classifier", return_probs=False)
    ident = base_model_predict(x, model_type="generic")
    jax.block_until_ready((probs, preds, ident))

    ref_probs = jax.nn.softmax(x, axis=1)
    ref_preds = jnp.argmax(x, axis=1)
    assert probs.shape == (B, C) and preds.shape == (B,)
    # approx reciprocal on the EUP -> allow a slightly looser tolerance
    assert jnp.allclose(probs, ref_probs, atol=1e-3)
    assert jnp.all(preds == ref_preds.astype(jnp.int32))
    assert jnp.allclose(ident, x)

    # Larger batch — exercises the multi-block pipeline incl. a partial tile.
    key2 = jax.random.PRNGKey(1)
    B2, C2 = 2000, 512                    # tile_b=1024 -> grid=2, last block partial
    x2 = jax.random.normal(key2, (B2, C2), dtype=jnp.float32)
    probs2 = base_model_predict(x2, model_type="classifier", return_probs=True)
    preds2 = base_model_predict(x2, model_type="classifier", return_probs=False)
    jax.block_until_ready((probs2, preds2))
    assert jnp.allclose(probs2, jax.nn.softmax(x2, axis=1), atol=1e-3)
    assert jnp.all(preds2 == jnp.argmax(x2, axis=1).astype(jnp.int32))

    print("KERNEL_OK")
</pallas_src>

<mosaic_0001>
module attributes {stable_mosaic.version = 11 : i64} {
  func.func @_softmax_kernel(%arg0: i32, %arg1: memref<8x32xf32, #tpu.memory_space<vmem>>, %arg2: memref<8x32xf32, #tpu.memory_space<vmem>>) attributes {dimension_semantics = [#tpu.dimension_semantics<parallel>], iteration_bounds = array<i64: 1>, scalar_prefetch = 0 : i64, scratch_operands = 0 : i64, tpu.core_type = #tpu.core_type<tc>, window_params = [{transform_indices = @transform_0, window_bounds = array<i64: 8, 32>}, {transform_indices = @transform_1, window_bounds = array<i64: 8, 32>}]} {
    %c0 = arith.constant 0 : index
    %c0_0 = arith.constant 0 : index
    %0 = vector.load %arg1[%c0, %c0_0] : memref<8x32xf32, #tpu.memory_space<vmem>>, vector<8x32xf32>
    %cst = arith.constant dense<0xFF800000> : vector<8xf32>
    %1 = vector.multi_reduction <maximumf>, %0, %cst [1] : vector<8x32xf32> to vector<8xf32>
    %2 = vector.shape_cast %1 : vector<8xf32> to vector<8x1xf32>
    %3 = vector.broadcast %2 : vector<8x1xf32> to vector<8x32xf32>
    %4 = arith.subf %0, %3 : vector<8x32xf32>
    %5 = math.exp %4 : vector<8x32xf32>
    %cst_1 = arith.constant dense<0.000000e+00> : vector<8xf32>
    %6 = vector.multi_reduction <add>, %5, %cst_1 [1] : vector<8x32xf32> to vector<8xf32>
    %7 = vector.shape_cast %6 : vector<8xf32> to vector<8x1xf32>
    %8 = tpu.reciprocal %7 {approx = true} : vector<8x1xf32> -> vector<8x1xf32>
    %9 = vector.broadcast %8 : vector<8x1xf32> to vector<8x32xf32>
    %10 = arith.mulf %5, %9 : vector<8x32xf32>
    %c0_2 = arith.constant 0 : index
    %c0_3 = arith.constant 0 : index
    %11 = vector.load %arg2[%c0_2, %c0_3] : memref<8x32xf32, #tpu.memory_space<vmem>>, vector<8x32xf32>
    tpu.vector_store %arg2[%c0_2, %c0_3], %10 {strides = array<i32>} : memref<8x32xf32, #tpu.memory_space<vmem>>, vector<8x32xf32>,
    return
  }
  func.func @transform_0(%arg0: i32) -> (i32, i32) {
    %c0_i32 = arith.constant 0 : i32
    %c0_i32_0 = arith.constant 0 : i32
    return %arg0, %c0_i32 : i32, i32
  }
  func.func @transform_1(%arg0: i32) -> (i32, i32) {
    %c0_i32 = arith.constant 0 : i32
    %c0_i32_0 = arith.constant 0 : i32
    return %arg0, %c0_i32 : i32, i32
  }
}

</mosaic_0001>

<bundles_post_ra>
// kernel: base_model_predict.1
= control target key start
LH: loop header
LB: loop body
LE: loop exit
PB: predicated region body
PF: predicated region fallthrough
CT: control target
= control target key end

     0   :  { %6 = vsyncpa [#allocation3], 0  ;;  %s143_s0 = inlined_call_operand.hbm [shape: f32[8,32], index: 0, kind: input, shape index: {}]   ;;  %s144_s1 = inlined_call_operand.hbm [shape: f32[8,32], index: 1, kind: output, shape index: {}]  }
   0x1   :  { %7 = vsyncpa [#allocation4], 0  ;;  %s104_s6 = smov [#allocation2]   ;;  %s56_s10 = scalar_lea.hbm %s143_s0, 128 }
   0x2   :  { %s14_s7 = sshll.u32 %s104_s6, 4  ;;  %p57_p0 = scmp.ne.s32.totalorder %s143_s0, %s56_s10  ;;  %s15_s7 = int_to_ptr.vmem [resolvable:$true] %s14_s7 }
   0x3   :  { %p60_p1 = scmp.lt.u32.totalorder %s56_s10, %s143_s0 }
   0x5   :  { %p62_p2 = pnand %p60_p1, %p57_p0 }
   0x7   :  { %65 = shalt.err (!%p62_p2)
}
   0x8   :  { %s66_s15 = scalar_lea.vmem %s15_s7, 128  ;;  %p71_p4 = scmp.lt.s32.totalorder %s15_s7, %s15_s7 }
   0x9   :  { %p67_p3 = scmp.ne.s32.totalorder %s15_s7, %s66_s15  ;;  %p72_p5 = scmp.lt.s32.totalorder %s66_s15, %s66_s15 }
   0xb   :  { %p73_p6 = por %p72_p5, %p71_p4 }
   0xd   :  { %p74_p7 = pnand %p73_p6, %p67_p3 }
   0xf   :  { %77 = shalt.err (!%p74_p7)
}
  0x10   :  { %17 = dma.hbm_to_vmem [thread:$0]  %s143_s0, 128, %s15_s7, [#allocation3]  }
  0x11   :  { %100 = dma.done.wait [#allocation3], 128  }
  0x12   :  { %101 = vsyncadd [#allocation3], 4294967168  ;;  %vm22_vm0 = vcmask 261120   ;;  %v21_v0 = vld [vmem:[#allocation2] sm:$0xff]  ;;  %s105_s18 = smov [#allocation5]  }
  0x13   :  { %v23_v1 = vsel %vm22_vm0, %v21_v0, -inf  ;;  %s41_s19 = sshll.u32 %s105_s18, 4  ;;  %s42_s19 = int_to_ptr.vmem [resolvable:$true] %s41_s19 }
  0x14   :  { %24 = vmax.xlane.f32.xlu0 %v23_v1  ;;  %s78_s0 = scalar_lea.vmem %s42_s19, 128  ;;  %p83_p9 = scmp.lt.s32.totalorder %s42_s19, %s42_s19 }
  0x15   :  { %p79_p8 = scmp.ne.s32.totalorder %s42_s19, %s78_s0  ;;  %p84_p10 = scmp.lt.s32.totalorder %s78_s0, %s78_s0 }
  0x17   :  { %p85_p11 = por %p84_p10, %p83_p9 }
  0x19   :  { %p86_p12 = pnand %p85_p11, %p79_p8 }
  0xa1   :  { %v25_v2 = vpop.xlane.xlu0 %24 }
  0xa2   :  { %v26_v3 = vsub.f32 %v21_v0, %v25_v2 }
  0xa4   :  { %v27_v4 = vmul.f32 1.442695, %v26_v3 }
  0xa6   :  { %52 = vpow2.f32 %v27_v4 }
  0xb0   :  { %v53_v5 = vpop.eup %52 }
  0xb1   :  { %v29_v6 = vsel %vm22_vm0, %v53_v5, 0.0 }
  0xb2   :  { %30 = vadd.xlane.f32.xlu0 %v29_v6 }
 0x13f   :  { %v31_v7 = vpop.xlane.xlu0 %30 }
 0x140   :  { %54 = vrcp.f32 %v31_v7 }
 0x14a   :  { %v55_v8 = vpop.eup %54 }
 0x14b   :  { %v33_v9 = vmul.f32 %v55_v8, %v53_v5 }
 0x14d   :  { %34 = vst.msk [vmem:[#allocation5] sm:$0xff] %vm22_vm0, %v33_v9 }
 0x14e   :  { %89 = shalt.err (!%p86_p12)
}
 0x14f   :  { %s90_s22 = scalar_lea.hbm %s144_s1, 128 }
 0x150   :  { %p91_p13 = scmp.ne.s32.totalorder %s144_s1, %s90_s22  ;;  %p94_p0 = scmp.lt.u32.totalorder %s90_s22, %s144_s1 }
 0x152   :  { %p96_p1 = pnand %p94_p0, %p91_p13 }
 0x154   :  { %99 = shalt.err (!%p96_p1)
}
 0x155   :  { %44 = dma.vmem_to_hbm [thread:$0]  %s42_s19, 128, %s144_s1, [#allocation4]  }
 0x156   :  { %102 = dma.done.wait [#allocation4], 128  }
 0x157   :  { %103 = vsyncadd [#allocation4], 4294967168 }
 0x158   :  { %48 = vsyncpa [#allocation3], 1 }
 0x159   :  { %49 = vsyncpa [#allocation4], 1 }

</bundles_post_ra>
